<compile_context>
chip_gen: v6e
topology: v6e:2x2x1
jax: 0.10.0
libtpu: 0.0.40
codegen_flags: <defaults>
</compile_context>

<pallas_src>
import functools

import jax
import jax.numpy as jnp
from jax.experimental import pallas as pl
from jax.experimental.pallas import tpu as pltpu


def _round_up(x, m):
    return (x + m - 1) // m * m


def _default_vmem_limit():
    # Size the scoped-VMEM limit against physical VMEM: 128 MiB on v5e/v6e,
    # only 64 MiB per TensorCore on v7x.
    try:
        cap = pltpu.get_tpu_info().vmem_capacity_bytes
    except Exception:  # conservative fallback if the query is unavailable
        cap = 128 * 1024 * 1024
    return min(96 * 1024 * 1024, int(cap) * 3 // 4)


def _gat_stage_kernel(h_ref, w_ref, a1_ref, a2_ref, wh_ref, f1t_ref, f2t_ref):
    """Per-batch staging: Wh = h @ W, f1^T = (Wh.a1)^T, f2^T = (Wh.a2)^T."""
    # h_ref: (1, Np, F_in)   w_ref: (F_in, F_out)   a1/a2: (1, F_out) f32
    # wh_ref: (1, Np, F_out) matmul dtype           f1t/f2t: (1, 1, Np) f32
    wh_f32 = jnp.dot(h_ref[0], w_ref[...],
                     preferred_element_type=jnp.float32)          # (Np, F_out)
    wh_ref[0] = wh_f32.astype(wh_ref.dtype)
    # a1/a2 projections on the VPU (lane reduce); avoids 1-2 lane MXU matmuls.
    f1 = jnp.sum(wh_f32 * a1_ref[...], axis=-1, keepdims=True)    # (Np, 1)
    f2 = jnp.sum(wh_f32 * a2_ref[...], axis=-1, keepdims=True)    # (Np, 1)
    f1t_ref[0] = jnp.transpose(f1)                                # (1, Np) lane-dense
    f2t_ref[0] = jnp.transpose(f2)


def _gat_attn_kernel(adj_ref, wh_ref, f1t_ref, f2t_ref, o_ref, *,
                     alpha, concat, ew_dtype, approx_recip):
    # adj_ref: (1, TQ, Np) int8    wh_ref: (1, Np, F_out) matmul dtype
    # f1t_ref: (1, 1, TQ) f32      f2t_ref: (1, 1, Np) f32
    # o_ref:   (1, TQ, F_out) f32
    ew = ew_dtype
    f1_col = jnp.transpose(f1t_ref[0]).astype(ew)                 # (TQ, 1)
    f2_row = f2t_ref[0].astype(ew)                                # (1, Np)

    # e[i, j] = LeakyReLU(a1.Wh[i] + a2.Wh[j]); mask non-edges. One fused where-chain,
    # mask built directly from the packed int8 adjacency.
    logits = f1_col + f2_row                                      # (TQ, Np) ew
    alpha_c = jnp.asarray(alpha, dtype=ew)
    neg_big = jnp.asarray(-9e15, dtype=ew)
    mask = adj_ref[0] != 0
    att = jnp.where(mask, jnp.where(logits > 0, logits, alpha_c * logits), neg_big)

    # Numerically-stable softmax numerator (row max is exact in bf16 too); the row sum
    # is accumulated in f32 to avoid denominator drift for large N.
    att_max = jnp.max(att, axis=-1, keepdims=True)
    att_exp = jnp.exp(att - att_max)                              # (TQ, Np) ew
    att_sum = jnp.sum(att_exp, axis=-1, keepdims=True,
                      dtype=jnp.float32)                          # (TQ, 1) f32

    # Deferred normalization: unnormalized PV matmul on the MXU, then scale the small
    # (TQ, F_out) result instead of the (TQ, Np) attention matrix.
    pv = jnp.dot(att_exp.astype(wh_ref.dtype), wh_ref[0],
                 preferred_element_type=jnp.float32)              # (TQ, F_out)
    h_prime = pv * pl.reciprocal(att_sum, approx=approx_recip)

    if concat:
        # ELU. exp(x)-1 on the negative branch: <= 1 ulp-of-1.0 off expm1, far below
        # the matmul noise floor.
        h_prime = jnp.where(h_prime > 0, h_prime, jnp.exp(h_prime) - 1.0)

    o_ref[0] = h_prime.astype(o_ref.dtype)


def gat_layer(h, adj, W, a, *, alpha=0.2, concat=True, block_q=128,
              matmul_dtype=jnp.bfloat16, elementwise_dtype=None,
              approx_reciprocal=True):
    """Pallas GAT forward. h:(B,N,F_in), adj:(B,N,N) (any >0 = edge),
    W:(F_in,F_out), a:(2*F_out,1). Returns (B,N,F_out) float32.

    block_q: query-row tile; must be a multiple of 128. Use 128 on v7x (64 MiB VMEM),
    up to 256 on v5e/v6e for better pipeline/MXU amortization at large N.
    """
    B, N, F_in = h.shape
    F_out = W.shape[1]
    assert a.shape == (2 * F_out, 1)
    assert block_q % 128 == 0, "block_q must be a multiple of 128"

    if elementwise_dtype is None:
        # bf16 elementwise chain on the bf16 fast path (2x VPU/EUP throughput on
        # v6e/v7x; lowered to f32 ops on v5e), f32 on the exact path.
        if jnp.dtype(matmul_dtype) == jnp.dtype(jnp.bfloat16):
            elementwise_dtype = jnp.bfloat16
        else:
            elementwise_dtype = jnp.float32

    # Pad N to a lane-dense multiple of 128 and to the row tile. Padded rows/cols are
    # masked via the zero-padded adjacency and sliced off afterwards.
    n_pad = _round_up(N, 128)
    tq = min(block_q, n_pad)          # always a multiple of 128
    n_pad = _round_up(n_pad, tq)
    n_q = n_pad // tq

    h_c = h.astype(matmul_dtype)      # ship h/W in matmul dtype: half HBM/VMEM on bf16
    adj_i8 = (adj > 0).astype(jnp.int8)
    if n_pad != N:
        h_c = jnp.pad(h_c, ((0, 0), (0, n_pad - N), (0, 0)))
        adj_i8 = jnp.pad(adj_i8, ((0, 0), (0, n_pad - N), (0, n_pad - N)))

    W_c = W.astype(matmul_dtype)
    a1 = a[:F_out, :].T.astype(jnp.float32)      # (1, F_out)
    a2 = a[F_out:, :].T.astype(jnp.float32)      # (1, F_out)

    vmem_limit = _default_vmem_limit()

    # ---- stage Wh / f1^T / f2^T once per batch element (no q dependency left) ----
    wh, f1t, f2t = pl.pallas_call(
        _gat_stage_kernel,
        out_shape=(
            jax.ShapeDtypeStruct((B, n_pad, F_out), matmul_dtype),
            jax.ShapeDtypeStruct((B, 1, n_pad), jnp.float32),
            jax.ShapeDtypeStruct((B, 1, n_pad), jnp.float32),
        ),
        grid_spec=pltpu.PrefetchScalarGridSpec(
            num_scalar_prefetch=0,
            grid=(B,),
            in_specs=[
                pl.BlockSpec((1, n_pad, F_in), lambda b: (b, 0, 0)),
                pl.BlockSpec((F_in, F_out), lambda b: (0, 0)),
                pl.BlockSpec((1, F_out), lambda b: (0, 0)),
                pl.BlockSpec((1, F_out), lambda b: (0, 0)),
            ],
            out_specs=[
                pl.BlockSpec((1, n_pad, F_out), lambda b: (b, 0, 0)),
                pl.BlockSpec((1, 1, n_pad), lambda b: (b, 0, 0)),
                pl.BlockSpec((1, 1, n_pad), lambda b: (b, 0, 0)),
            ],
        ),
        compiler_params=pltpu.CompilerParams(
            dimension_semantics=("parallel",),
            vmem_limit_bytes=vmem_limit,
        ),
    )(h_c, W_c, a1, a2)

    # ---- masked softmax attention + PV matmul, tiled over query rows ----
    attn_kernel = functools.partial(
        _gat_attn_kernel, alpha=float(alpha), concat=bool(concat),
        ew_dtype=elementwise_dtype, approx_recip=bool(approx_reciprocal))

    out = pl.pallas_call(
        attn_kernel,
        out_shape=jax.ShapeDtypeStruct((B, n_pad, F_out), jnp.float32),
        grid_spec=pltpu.PrefetchScalarGridSpec(
            num_scalar_prefetch=0,
            grid=(B, n_q),
            in_specs=[
                pl.BlockSpec((1, tq, n_pad), lambda b, q: (b, q, 0)),     # adj row slab
                pl.BlockSpec((1, n_pad, F_out), lambda b, q: (b, 0, 0)),  # Wh (resident)
                pl.BlockSpec((1, 1, tq), lambda b, q: (b, 0, q)),         # f1^T tile
                pl.BlockSpec((1, 1, n_pad), lambda b, q: (b, 0, 0)),      # f2^T (resident)
            ],
            out_specs=pl.BlockSpec((1, tq, F_out), lambda b, q: (b, q, 0)),
        ),
        compiler_params=pltpu.CompilerParams(
            # No cross-iteration dependency remains, so both axes are parallel
            # (lets v7x's two TensorCores share the row-tile axis even at B=1).
            dimension_semantics=("parallel", "parallel"),
            vmem_limit_bytes=vmem_limit,
        ),
    )(adj_i8, wh, f1t, f2t)

    return out[:, :N, :]


def _gat_reference(h, adj, W, a, *, alpha=0.2, concat=True):
    """Pure-JAX reference mirroring the PyTorch forward (eval mode)."""
    F_out = W.shape[1]
    hp = jax.lax.Precision.HIGHEST
    Wh = jnp.matmul(h, W, precision=hp)                       # (B, N, F_out)
    f1 = jnp.matmul(Wh, a[:F_out, :], precision=hp)           # (B, N, 1)
    f2 = jnp.matmul(Wh, a[F_out:, :], precision=hp)           # (B, N, 1)
    logits = f1 + jnp.swapaxes(f2, 1, 2)                      # (B, N, N)
    e = jnp.where(logits > 0, logits, alpha * logits)
    att = jnp.where(adj > 0, e, -9e15)
    att = jax.nn.softmax(att, axis=2)
    h_prime = jnp.matmul(att, Wh, precision=hp)
    return jax.nn.elu(h_prime) if concat else h_prime


def _xavier_uniform(key, shape, gain=1.414):
    fan_in, fan_out = shape[0], shape[1]
    bound = gain * jnp.sqrt(6.0 / (fan_in + fan_out))
    return jax.random.uniform(key, shape, jnp.float32, -bound, bound)


if __name__ == "__main__":
    # Small deterministic problem. N is deliberately NOT a multiple of 128 to exercise
    # the padding/masking path; F_OUT=128 keeps the output lane-dense.
    B, N, F_IN, F_OUT = 2, 100, 32, 128
    ALPHA = 0.2

    key = jax.random.PRNGKey(0)
    k_h, k_adj, k_w, k_a = jax.random.split(key, 4)

    h = jax.random.normal(k_h, (B, N, F_IN), dtype=jnp.float32)
    # Random binary adjacency with self-loops (every row has at least one edge).
    adj = (jax.random.uniform(k_adj, (B, N, N)) > 0.5).astype(jnp.float32)
    adj = jnp.maximum(adj, jnp.eye(N, dtype=jnp.float32)[None, :, :])

    W = _xavier_uniform(k_w, (F_IN, F_OUT))
    a = _xavier_uniform(k_a, (2 * F_OUT, 1))

    ref = _gat_reference(h, adj, W, a, alpha=ALPHA, concat=True)

    # Exact-semantics check: f32 matmuls + f32 elementwise + exact reciprocal.
    out_f32 = gat_layer(h, adj, W, a, alpha=ALPHA, concat=True,
                        matmul_dtype=jnp.float32, approx_reciprocal=False)
    out_f32 = jax.block_until_ready(out_f32)
    assert out_f32.shape == (B, N, F_OUT)
    assert jnp.allclose(out_f32, ref, atol=2e-3, rtol=2e-3), "f32 kernel mismatch"

    # Fast path: bf16 MXU operands + bf16 elementwise chain (f32 row-sum / f32 acc)
    # + EUP approx reciprocal.
    out = gat_layer(h, adj, W, a, alpha=ALPHA, concat=True)
    out = jax.block_until_ready(out)
    assert out.shape == (B, N, F_OUT)
    assert jnp.allclose(out, ref, atol=1e-1, rtol=1e-1), "bf16 kernel mismatch"

    print("KERNEL_OK")
</pallas_src>

<mosaic_0001>
module attributes {stable_mosaic.version = 11 : i64} {
  func.func @_gat_stage_kernel(%arg0: i32, %arg1: memref<1x128x32xf32, #tpu.memory_space<vmem>>, %arg2: memref<32x128xf32, #tpu.memory_space<vmem>>, %arg3: memref<1x128xf32, #tpu.memory_space<vmem>>, %arg4: memref<1x128xf32, #tpu.memory_space<vmem>>, %arg5: memref<1x128x128xf32, #tpu.memory_space<vmem>>, %arg6: memref<1x1x128xf32, #tpu.memory_space<vmem>>, %arg7: memref<1x1x128xf32, #tpu.memory_space<vmem>>) attributes {dimension_semantics = [#tpu.dimension_semantics<parallel>], iteration_bounds = array<i64: 2>, scalar_prefetch = 0 : i64, scratch_operands = 0 : i64, tpu.core_type = #tpu.core_type<tc>, window_params = [{transform_indices = @transform_0, window_bounds = array<i64: 1, 128, 32>}, {pipeline_mode = #tpu.pipeline_mode<synchronous>, transform_indices = @transform_1, window_bounds = array<i64: 32, 128>}, {pipeline_mode = #tpu.pipeline_mode<synchronous>, transform_indices = @transform_2, window_bounds = array<i64: 1, 128>}, {pipeline_mode = #tpu.pipeline_mode<synchronous>, transform_indices = @transform_3, window_bounds = array<i64: 1, 128>}, {transform_indices = @transform_4, window_bounds = array<i64: 1, 128, 128>}, {transform_indices = @transform_5, window_bounds = array<i64: 1, 1, 128>}, {transform_indices = @transform_6, window_bounds = array<i64: 1, 1, 128>}]} {
    %c0 = arith.constant 0 : index
    %c0_0 = arith.constant 0 : index
    %c0_1 = arith.constant 0 : index
    %0 = vector.load %arg1[%c0, %c0_0, %c0_1] : memref<1x128x32xf32, #tpu.memory_space<vmem>>, vector<1x128x32xf32>
    %1 = vector.shape_cast %0 : vector<1x128x32xf32> to vector<128x32xf32>
    %c0_2 = arith.constant 0 : index
    %c0_3 = arith.constant 0 : index
    %2 = vector.load %arg2[%c0_2, %c0_3] : memref<32x128xf32, #tpu.memory_space<vmem>>, vector<32x128xf32>
    %cst = arith.constant dense<0.000000e+00> : vector<128x128xf32>
    %3 = tpu.matmul %1, %2, %cst {dimension_numbers = #tpu.dot_dimension_numbers<[1], [0], [0], [1], [0, 0, 1, 1], [], []>} : vector<128x32xf32>, vector<32x128xf32>, vector<128x128xf32> -> vector<128x128xf32>
    %c0_4 = arith.constant 0 : index
    %c0_5 = arith.constant 0 : index
    %c0_6 = arith.constant 0 : index
    %4 = vector.load %arg5[%c0_4, %c0_5, %c0_6] : memref<1x128x128xf32, #tpu.memory_space<vmem>>, vector<1x128x128xf32>
    %5 = vector.shape_cast %4 : vector<1x128x128xf32> to vector<128x128xf32>
    %6 = vector.shape_cast %3 : vector<128x128xf32> to vector<1x128x128xf32>
    tpu.vector_store %arg5[%c0_4, %c0_5, %c0_6], %6 {strides = array<i32>} : memref<1x128x128xf32, #tpu.memory_space<vmem>>, vector<1x128x128xf32>,
    %c0_7 = arith.constant 0 : index
    %c0_8 = arith.constant 0 : index
    %7 = vector.load %arg3[%c0_7, %c0_8] : memref<1x128xf32, #tpu.memory_space<vmem>>, vector<1x128xf32>
    %8 = vector.broadcast %7 : vector<1x128xf32> to vector<128x128xf32>
    %9 = arith.mulf %3, %8 : vector<128x128xf32>
    %cst_9 = arith.constant dense<0.000000e+00> : vector<128xf32>
    %10 = vector.multi_reduction <add>, %9, %cst_9 [1] : vector<128x128xf32> to vector<128xf32>
    %11 = vector.shape_cast %10 : vector<128xf32> to vector<128x1xf32>
    %c0_10 = arith.constant 0 : index
    %c0_11 = arith.constant 0 : index
    %12 = vector.load %arg4[%c0_10, %c0_11] : memref<1x128xf32, #tpu.memory_space<vmem>>, vector<1x128xf32>
    %13 = vector.broadcast %12 : vector<1x128xf32> to vector<128x128xf32>
    %14 = arith.mulf %3, %13 : vector<128x128xf32>
    %cst_12 = arith.constant dense<0.000000e+00> : vector<128xf32>
    %15 = vector.multi_reduction <add>, %14, %cst_12 [1] : vector<128x128xf32> to vector<128xf32>
    %16 = vector.shape_cast %15 : vector<128xf32> to vector<128x1xf32>
    %17 = tpu.transpose %11, [1, 0] : vector<128x1xf32> -> vector<1x128xf32>
    %c0_13 = arith.constant 0 : index
    %c0_14 = arith.constant 0 : index
    %c0_15 = arith.constant 0 : index
    %18 = vector.load %arg6[%c0_13, %c0_14, %c0_15] : memref<1x1x128xf32, #tpu.memory_space<vmem>>, vector<1x1x128xf32>
    %19 = vector.shape_cast %18 : vector<1x1x128xf32> to vector<1x128xf32>
    %20 = vector.shape_cast %17 : vector<1x128xf32> to vector<1x1x128xf32>
    tpu.vector_store %arg6[%c0_13, %c0_14, %c0_15], %20 {strides = array<i32>} : memref<1x1x128xf32, #tpu.memory_space<vmem>>, vector<1x1x128xf32>,
    %21 = tpu.transpose %16, [1, 0] : vector<128x1xf32> -> vector<1x128xf32>
    %c0_16 = arith.constant 0 : index
    %c0_17 = arith.constant 0 : index
    %c0_18 = arith.constant 0 : index
    %22 = vector.load %arg7[%c0_16, %c0_17, %c0_18] : memref<1x1x128xf32, #tpu.memory_space<vmem>>, vector<1x1x128xf32>
    %23 = vector.shape_cast %22 : vector<1x1x128xf32> to vector<1x128xf32>
    %24 = vector.shape_cast %21 : vector<1x128xf32> to vector<1x1x128xf32>
    tpu.vector_store %arg7[%c0_16, %c0_17, %c0_18], %24 {strides = array<i32>} : memref<1x1x128xf32, #tpu.memory_space<vmem>>, vector<1x1x128xf32>,
    return
  }
  func.func @transform_0(%arg0: i32) -> (i32, i32, i32) {
    %c0_i32 = arith.constant 0 : i32
    %c0_i32_0 = arith.constant 0 : i32
    %c0_i32_1 = arith.constant 0 : i32
    return %arg0, %c0_i32, %c0_i32_0 : i32, i32, i32
  }
  func.func @transform_1(%arg0: i32) -> (i32, i32) {
    %c0_i32 = arith.constant 0 : i32
    %c0_i32_0 = arith.constant 0 : i32
    %c0_i32_1 = arith.constant 0 : i32
    return %c0_i32, %c0_i32_0 : i32, i32
  }
  func.func @transform_2(%arg0: i32) -> (i32, i32) {
    %c0_i32 = arith.constant 0 : i32
    %c0_i32_0 = arith.constant 0 : i32
    %c0_i32_1 = arith.constant 0 : i32
    return %c0_i32, %c0_i32_0 : i32, i32
  }
  func.func @transform_3(%arg0: i32) -> (i32, i32) {
    %c0_i32 = arith.constant 0 : i32
    %c0_i32_0 = arith.constant 0 : i32
    %c0_i32_1 = arith.constant 0 : i32
    return %c0_i32, %c0_i32_0 : i32, i32
  }
  func.func @transform_4(%arg0: i32) -> (i32, i32, i32) {
    %c0_i32 = arith.constant 0 : i32
    %c0_i32_0 = arith.constant 0 : i32
    %c0_i32_1 = arith.constant 0 : i32
    return %arg0, %c0_i32, %c0_i32_0 : i32, i32, i32
  }
  func.func @transform_5(%arg0: i32) -> (i32, i32, i32) {
    %c0_i32 = arith.constant 0 : i32
    %c0_i32_0 = arith.constant 0 : i32
    %c0_i32_1 = arith.constant 0 : i32
    return %arg0, %c0_i32, %c0_i32_0 : i32, i32, i32
  }
  func.func @transform_6(%arg0: i32) -> (i32, i32, i32) {
    %c0_i32 = arith.constant 0 : i32
    %c0_i32_0 = arith.constant 0 : i32
    %c0_i32_1 = arith.constant 0 : i32
    return %arg0, %c0_i32, %c0_i32_0 : i32, i32, i32
  }
}

</mosaic_0001>

<bundles_post_ra>
// kernel: tpu_custom_call.1
= control target key start
LH: loop header
LB: loop body
LE: loop exit
PB: predicated region body
PF: predicated region fallthrough
CT: control target
= control target key end

     0   :  { %12 = vsyncpa [#allocation3], 0  ;;  %s1430_s0 = inlined_call_operand.vmem [shape: f32[2,128,32], index: 0, kind: input, shape index: {}]   ;;  %s1431_s1 = inlined_call_operand.vmem [shape: f32[32,128], index: 1, kind: input, shape index: {}]   ;;  %s1432_s2 = inlined_call_operand.vmem [shape: f32[1,128], index: 2, kind: input, shape index: {}]   ;;  %s1433_s3 = inlined_call_operand.vmem [shape: f32[1,128], index: 3, kind: input, shape index: {}]   ;;  %s1434_s4 = inlined_call_operand.hbm [shape: f32[2,128,128], index: 4, kind: output, shape index: {0}]   ;;  %s1435_s5 = inlined_call_operand.hbm [shape: f32[2,1,128], index: 5, kind: output, shape index: {1}]   ;;  %s1436_s6 = inlined_call_operand.hbm [shape: f32[2,1,128], index: 6, kind: output, shape index: {2}]  }
   0x1   :  { %14 = vsyncpa [#allocation3 + $0x1], 0 }
   0x2   :  { %15 = vsyncpa [#allocation5], 0 }
   0x3   :  { %17 = vsyncpa [#allocation5 + $0x1], 0  ;;  %s1138_s21 = smov 0   ;;  %s1140_s22 = smov 0  }
   0x4   :  { %s1142_s23 = smov 0   ;;  %s1144_s24 = smov 0  }
   0x5 LB: > { %s1159_s25 = sadd.s32 4294967295, %s1096_s24   ;;  %s1437_s26 = sadd.s32 4294967294, %s1096_s24   ;;  %s1096_s24 = sphi %s1144_s24, %s1446_s24   ;;  %s1092_s23 = sphi %s1142_s23, %s1445_s23   ;;  %s1088_s22 = sphi %s1140_s22, %s1444_s22   ;;  %s1084_s21 = sphi %s1138_s21, %s1443_s21  }
   0x6   : > { %s1163_s27 = sadd.s32 1, %s1096_s24   ;;  %s119_s28 = sadd.s32 1, %s1092_s23 }
   0x7   : > { %s116_s29 = ssub.s32 %s1096_s24, %s1163_s27  ;;  %p129_p0 = scmp.ne.s32.totalorder %s1092_s23, %s1088_s22 }
   0x8   : > { %p117_p1 = scmp.eq.s32.totalorder %s116_s29, 0  ;;  %p130_p2 = scmp.eq.s32.totalorder %s1159_s25, 1 }
   0x9   : > { %p135_p3 = scmp.ne.s32.totalorder %s1088_s22, %s1084_s21  ;;  %p136_p4 = scmp.eq.s32.totalorder %s1437_s26, 1 }
   0xa   : > { %s1176_s30 = scalar_select %p117_p1, %s1092_s23, %s119_s28  }
   0xb   : > { %p1178_p5 = por %p130_p2, %p129_p0  ;;  %p1182_p6 = por %p136_p4, %p135_p3 }
   0xc   : > { %p838_p7 = scmp.ge.s32.totalorder %s1096_s24, 1  ;;  %p223_p8 = scmp.lt.s32.totalorder %s1096_s24, 3 }
   0xe   : > { %p224_p9 = pnand %p838_p7, %p223_p8 }
   0xf   : > { %p261_p10 = scmp.lt.s32.totalorder (!%p224_p9), %s1159_s25, 1  ;;  %s1240_s29 = sand.u32 (!%p224_p9), 1, %s1088_s22  }
  0x10   : > { %227 = sbr.rel (%p224_p9) target bundleno = 559 (0x22f), region = 36  ;;  %s839_s9 = sshll.u32 (!%p224_p9), %s1240_s29, 7 }
  0x11   : > { %s1253_s14 = scalar_lea.vmem (!%p224_p9), [#allocation2], %s839_s9  ;;  %s673_s20 = scalar_lea.sflag (!%p224_p9), [#allocation3], %s1240_s29 }
  0x12   : > { %s694_s16 = sshll.u32 (!%p224_p9), %s1253_s14, 4  ;;  %s1098_s9 = smov (!%p224_p9), [#allocation2]   ;;  %s1322_s16 = int_to_ptr.vmem [resolvable:$true] %s694_s16 }
  0x13   : > { %s984_s10 = sshll.u32 (!%p224_p9), %s1098_s9, 4  ;;  %s985_s10 = int_to_ptr.vmem [resolvable:$false] %s984_s10 }
  0x14   : > { %s986_s11 = scalar_lea.vmem (!%p224_p9), %s985_s10, 4096  ;;  %p987_p0 = scmp.lt.s32.totalorder (!%p224_p9), %s1322_s16, %s985_s10 }
  0x15   : > { %v285_v0 = vld [vmem:[%s1431_s1 + $0x18] sm:$0xff]  ;;  %v284_v1 = vld [vmem:[%s1431_s1 + $0x10] sm:$0xff]  ;;  %v283_v2 = vld [vmem:[%s1431_s1 + $0x8] sm:$0xff]  ;;  %s262_s15 = scalar_select %p261_p10, %s1159_s25, 1  ;;  %vm286_vm0 = vcmask 261120  }
  0x16   : > { %889 = vmatprep.subr.mxu0 %v285_v0  ;;  %921 = vmatprep.subr.mxu1 %v285_v0  ;;  %v282_v3 = vld [vmem:[%s1431_s1] sm:$0xff] }
  0x17   : > { %890 = vmatpush3.msra.mxu0 %v285_v0  ;;  %925 = vmatpush3.msra.mxu1 %v285_v0  ;;  %s867_s18 = sshll.u32 %s262_s15, 7  ;;  %v1246_v20 = vld [vmem:[%s1433_s3] ss:$0 sm:$0xff]  ;;  %s868_s15 = sshll.u32 %s1159_s25, 11 }
  0x18   : > { %891 = vmatprep.subr.mxu0 %v284_v1  ;;  %922 = vmatprep.subr.mxu1 %v284_v1  ;;  %s1205_s28 = scalar_lea.vmem %s1430_s0, %s867_s18  ;;  %v1251_v21 = vld [vmem:[%s1432_s2] ss:$0 sm:$0xff]  ;;  %s1320_s19 = scalar_lea.hbm %s1434_s4, %s868_s15 }
  0x19   : > { %892 = vmatpush3.msra.mxu0 %v284_v1  ;;  %926 = vmatpush3.msra.mxu1 %v284_v1  ;;  %v266_v4 = vld [vmem:[%s1205_s28] sm:$0xff]  ;;  %v267_v5 = vld [vmem:[%s1205_s28 + $0x8] sm:$0xff]  ;;  %v268_v7 = vld [vmem:[%s1205_s28 + $0x10] sm:$0xff] }
  0x1a   : > { %893 = vmatprep.subr.mxu0 %v283_v2  ;;  %923 = vmatprep.subr.mxu1 %v283_v2  ;;  %v274_v6 = vld [vmem:[%s1205_s28 + $0x40] sm:$0xff]  ;;  %v275_v8 = vld [vmem:[%s1205_s28 + $0x48] sm:$0xff]  ;;  %v276_v9 = vld [vmem:[%s1205_s28 + $0x50] sm:$0xff] }
  0x1b   : > { %894 = vmatpush3.msra.mxu0 %v283_v2  ;;  %927 = vmatpush3.msra.mxu1 %v283_v2  ;;  %v269_v10 = vld [vmem:[%s1205_s28 + $0x18] sm:$0xff]  ;;  %v270_v11 = vld [vmem:[%s1205_s28 + $0x20] sm:$0xff]  ;;  %v271_v14 = vld [vmem:[%s1205_s28 + $0x28] sm:$0xff] }
  0x1c   : > { %895 = vmatprep.subr.mxu0 %v282_v3  ;;  %897 = vmatprep.mubr.msk.f32.mxu0 %vm286_vm0, %v266_v4  ;;  %v277_v12 = vld [vmem:[%s1205_s28 + $0x58] sm:$0xff]  ;;  %v278_v13 = vld [vmem:[%s1205_s28 + $0x60] sm:$0xff]  ;;  %v272_v15 = vld [vmem:[%s1205_s28 + $0x30] sm:$0xff] }
  0x1d   : > { %896 = vmatpush3.msra.mxu0 %v282_v3  ;;  %924 = vmatprep.subr.mxu1 %v282_v3  ;;  %v279_v16 = vld [vmem:[%s1205_s28 + $0x68] sm:$0xff]  ;;  %v280_v17 = vld [vmem:[%s1205_s28 + $0x70] sm:$0xff]  ;;  %v273_v18 = vld [vmem:[%s1205_s28 + $0x38] sm:$0xff] }
  0x1e   : > { %898 = vmatmul.mubr.msk.f32.vlgmr.msra.gmra.mxu0 %vm286_vm0, %v267_v5  ;;  %928 = vmatpush3.msra.mxu1 %v282_v3  ;;  %v281_v19 = vld [vmem:[%s1205_s28 + $0x78] sm:$0xff]  ;;  %s980_s28 = scalar_lea.vmem %s1322_s16, 2048 }
  0x1f   : > { %909 = vmatprep.mubr.msk.f32.mxu1 %vm286_vm0, %v274_v6  ;;  %900 = vmatprep.mubr.msk.f32.mxu0 %vm286_vm0, %v268_v7  ;;  %p981_p11 = scmp.ne.s32.totalorder %s1322_s16, %s980_s28  ;;  %p988_p1 = scmp.lt.s32.totalorder %s986_s11, %s980_s28 }
  0x20   : > { %910 = vmatmul.mubr.msk.f32.vlgmr.msra.gmra.mxu1 %vm286_vm0, %v275_v8 }
  0x21   : > { %912 = vmatprep.mubr.msk.f32.mxu1 %vm286_vm0, %v276_v9  ;;  %p982_p12 = pnand %p981_p11, %p1178_p5  ;;  %p989_p2 = por %p988_p1, %p987_p0 }
  0x22   : > { %901 = vmatmul.mubr.msk.f32.gmra.mxu0 %vm286_vm0, %v269_v10 }
  0x23   : > { %903 = vmatprep.mubr.msk.f32.mxu0 %vm286_vm0, %v270_v11  ;;  %p983_p13 = pneg %p982_p12 }
  0x24   : > { %913 = vmatmul.mubr.msk.f32.gmra.mxu1 %vm286_vm0, %v277_v12 }
  0x25   : > { %915 = vmatprep.mubr.msk.f32.mxu1 %vm286_vm0, %v278_v13  ;;  %p990_p3 = pnand %p989_p2, %p983_p13 }
  0x26   : > { %904 = vmatmul.mubr.msk.f32.gmra.mxu0 %vm286_vm0, %v271_v14 }
  0x27   : > { %906 = vmatprep.mubr.msk.f32.mxu0 %vm286_vm0, %v272_v15 }
  0x28   : > { %916 = vmatmul.mubr.msk.f32.gmra.mxu1 %vm286_vm0, %v279_v16 }
  0x29   : > { %918 = vmatprep.mubr.msk.f32.mxu1 %vm286_vm0, %v280_v17 }
  0x2a   : > { %907 = vmatmul.mubr.msk.f32.gmra.mxu0 %vm286_vm0, %v273_v18 }
  0x2c   : > { %919 = vmatmul.mubr.msk.f32.gmra.mxu1 %vm286_vm0, %v281_v19 }
  0xde   : > { %v899_v22 = vpop.f32.mrf.mxu0 }
  0xdf   : > { %481 = vst [vmem:[%s1253_s14 + $0x8] sm:$0xff] %v899_v22  ;;  %v559_v23 = vmul.f32 %v899_v22, %v1246_v20  ;;  %v504_v24 = vmul.f32 %v899_v22, %v1251_v21 }
  0xe0   : > { %v401_v25 = vpop.f32.mrf.mxu0  ;;  %v911_v26 = vpop.f32.mrf.mxu1 }
  0xe1   : > { %480 = vst [vmem:[%s1253_s14] sm:$0xff] %v401_v25  ;;  %489 = vst [vmem:[%s1253_s14 + $0x48] sm:$0xff] %v911_v26  ;;  %576 = vadd.xlane.f32.xlu1 %v559_v23  ;;  %521 = vadd.xlane.f32.xlu0 %v504_v24  ;;  %v567_v27 = vmul.f32 %v911_v26, %v1246_v20  ;;  %v512_v28 = vmul.f32 %v911_v26, %v1251_v21 }
  0xe2   : > { %v441_v29 = vpop.f32.mrf.mxu1  ;;  %v902_v30 = vpop.f32.mrf.mxu0  ;;  %v503_v36 = vmul.f32 %v1251_v21, %v401_v25  ;;  %v558_v42 = vmul.f32 %v1246_v20, %v401_v25 }
  0xe3   : > { %488 = vst [vmem:[%s1253_s14 + $0x40] sm:$0xff] %v441_v29  ;;  %483 = vst [vmem:[%s1253_s14 + $0x18] sm:$0xff] %v902_v30  ;;  %v566_v35 = vmul.f32 %v1246_v20, %v441_v29  ;;  %v506_v39 = vmul.f32 %v902_v30, %v1251_v21  ;;  %v561_v45 = vmul.f32 %v902_v30, %v1246_v20 }
  0xe4   : > { %v914_v31 = vpop.f32.mrf.mxu1  ;;  %v411_v32 = vpop.f32.mrf.mxu0  ;;  %v511_v47 = vmul.f32 %v1251_v21, %v441_v29 }
  0xe5   : > { %592 = vadd.xlane.f32.xlu1 %v567_v27  ;;  %537 = vadd.xlane.f32.xlu0 %v512_v28  ;;  %491 = vst [vmem:[%s1253_s14 + $0x58] sm:$0xff] %v914_v31  ;;  %482 = vst [vmem:[%s1253_s14 + $0x10] sm:$0xff] %v411_v32  ;;  %v514_v48 = vmul.f32 %v914_v31, %v1251_v21  ;;  %v569_v49 = vmul.f32 %v914_v31, %v1246_v20 }
  0xe6   : > { %v451_v33 = vpop.f32.mrf.mxu1  ;;  %v905_v34 = vpop.f32.mrf.mxu0  ;;  %v560_v50 = vmul.f32 %v1246_v20, %v411_v32  ;;  %v505_v51 = vmul.f32 %v1251_v21, %v411_v32 }
  0xe7   : > { %490 = vst [vmem:[%s1253_s14 + $0x50] sm:$0xff] %v451_v33  ;;  %485 = vst [vmem:[%s1253_s14 + $0x28] sm:$0xff] %v905_v34  ;;  %v513_v52 = vmul.f32 %v1251_v21, %v451_v33  ;;  %v568_v53 = vmul.f32 %v1246_v20, %v451_v33  ;;  %v508_v55 = vmul.f32 %v905_v34, %v1251_v21 }
  0xe8   : > { %v917_v37 = vpop.f32.mrf.mxu1  ;;  %v421_v38 = vpop.f32.mrf.mxu0  ;;  %v563_v56 = vmul.f32 %v905_v34, %v1246_v20 }
  0xe9   : > { %590 = vadd.xlane.f32.xlu1 %v566_v35  ;;  %519 = vadd.xlane.f32.xlu0 %v503_v36  ;;  %493 = vst [vmem:[%s1253_s14 + $0x68] sm:$0xff] %v917_v37  ;;  %484 = vst [vmem:[%s1253_s14 + $0x20] sm:$0xff] %v421_v38  ;;  %v516_v54 = vmul.f32 %v917_v37, %v1251_v21  ;;  %v507_v57 = vmul.f32 %v1251_v21, %v421_v38 }
  0xea   : > { %v461_v40 = vpop.f32.mrf.mxu1  ;;  %v908_v41 = vpop.f32.mrf.mxu0  ;;  %v571_v58 = vmul.f32 %v917_v37, %v1246_v20  ;;  %v562_v59 = vmul.f32 %v1246_v20, %v421_v38 }
  0xeb   : > { %492 = vst [vmem:[%s1253_s14 + $0x60] sm:$0xff] %v461_v40  ;;  %487 = vst [vmem:[%s1253_s14 + $0x38] sm:$0xff] %v908_v41  ;;  %v570_v60 = vmul.f32 %v1246_v20, %v461_v40  ;;  %v515_v61 = vmul.f32 %v1251_v21, %v461_v40  ;;  %v510_v63 = vmul.f32 %v908_v41, %v1251_v21 }
  0xec   : > { %v920_v43 = vpop.f32.mrf.mxu1  ;;  %v431_v44 = vpop.f32.mrf.mxu0  ;;  %v565_v0 = vmul.f32 %v908_v41, %v1246_v20 }
  0xed   : > { %574 = vadd.xlane.f32.xlu0 %v558_v42  ;;  %525 = vadd.xlane.f32.xlu1 %v506_v39  ;;  %495 = vst [vmem:[%s1253_s14 + $0x78] sm:$0xff] %v920_v43  ;;  %486 = vst [vmem:[%s1253_s14 + $0x30] sm:$0xff] %v431_v44  ;;  %v518_v62 = vmul.f32 %v920_v43, %v1251_v21  ;;  %v509_v1 = vmul.f32 %v1251_v21, %v431_v44 }
  0xee   : > { %v471_v46 = vpop.f32.mrf.mxu1  ;;  %v573_v2 = vmul.f32 %v920_v43, %v1246_v20  ;;  %v564_v3 = vmul.f32 %v1246_v20, %v431_v44 }
  0xef   : > { %494 = vst [vmem:[%s1253_s14 + $0x70] sm:$0xff] %v471_v46  ;;  %v572_v4 = vmul.f32 %v1246_v20, %v471_v46  ;;  %v517_v5 = vmul.f32 %v1251_v21, %v471_v46 }
  0xf1   : > { %535 = vadd.xlane.f32.xlu0 %v511_v47  ;;  %580 = vadd.xlane.f32.xlu1 %v561_v45 }
  0xf5   : > { %541 = vadd.xlane.f32.xlu0 %v514_v48  ;;  %596 = vadd.xlane.f32.xlu1 %v569_v49 }
  0xf9   : > { %578 = vadd.xlane.f32.xlu0 %v560_v50  ;;  %523 = vadd.xlane.f32.xlu1 %v505_v51 }
  0xfd   : > { %539 = vadd.xlane.f32.xlu0 %v513_v52  ;;  %594 = vadd.xlane.f32.xlu1 %v568_v53 }
 0x101   : > { %545 = vadd.xlane.f32.xlu0 %v516_v54  ;;  %529 = vadd.xlane.f32.xlu1 %v508_v55 }
 0x105   : > { %584 = vadd.xlane.f32.xlu1 %v563_v56  ;;  %527 = vadd.xlane.f32.xlu0 %v507_v57 }
 0x109   : > { %600 = vadd.xlane.f32.xlu1 %v571_v58  ;;  %582 = vadd.xlane.f32.xlu0 %v562_v59 }
 0x10d   : > { %598 = vadd.xlane.f32.xlu1 %v570_v60  ;;  %543 = vadd.xlane.f32.xlu0 %v515_v61 }
 0x111   : > { %549 = vadd.xlane.f32.xlu0 %v518_v62  ;;  %533 = vadd.xlane.f32.xlu1 %v510_v63 }
 0x115   : > { %588 = vadd.xlane.f32.xlu1 %v565_v0  ;;  %531 = vadd.xlane.f32.xlu0 %v509_v1 }
 0x119   : > { %604 = vadd.xlane.f32.xlu1 %v573_v2  ;;  %586 = vadd.xlane.f32.xlu0 %v564_v3 }
 0x11d   : > { %602 = vadd.xlane.f32.xlu1 %v572_v4  ;;  %547 = vadd.xlane.f32.xlu0 %v517_v5 }
 0x16a   : > { %v577_v6 = vpop.xlane.xlu1 %576  ;;  %v522_v7 = vpop.xlane.xlu0 %521 }
 0x16e   : > { %v1303_v8 = vpop.xlane.xlu1 %592  ;;  %v1305_v9 = vpop.xlane.xlu0 %537 }
 0x172   : > { %v1307_v10 = vpop.xlane.xlu1 %590  ;;  %v520_v11 = vpop.xlane.xlu0 %519 }
 0x173   : > { %606 = vxpose.xlu0.b32.start [1/16] (narrow) %v520_v11, 8 }
 0x176   : > { %v575_v12 = vpop.xlane.xlu0 %574  ;;  %v526_v13 = vpop.xlane.xlu1 %525 }
 0x177   : > { %639 = vxpose.xlu1.b32.start [1/16] (narrow) %v575_v12, 8  ;;  %607 = vxpose.xlu0.b32.cont [2/16] (narrow) %v522_v7, 8 }
 0x17a   : > { %v1309_v14 = vpop.xlane.xlu0 %535  ;;  %v581_v15 = vpop.xlane.xlu1 %580 }
 0x17b   : > { %640 = vxpose.xlu1.b32.cont [2/16] (narrow) %v577_v6, 8 }
 0x17e   : > { %v1311_v16 = vpop.xlane.xlu0 %541  ;;  %v1313_v17 = vpop.xlane.xlu1 %596 }
 0x182   : > { %v579_v18 = vpop.xlane.xlu0 %578  ;;  %v524_v19 = vpop.xlane.xlu1 %523 }
 0x183   : > { %641 = vxpose.xlu1.b32.cont [3/16] (narrow) %v579_v18, 8  ;;  %608 = vxpose.xlu0.b32.cont [3/16] (narrow) %v524_v19, 8 }
 0x186   : > { %v540_v20 = vpop.xlane.xlu0 %539  ;;  %v595_v21 = vpop.xlane.xlu1 %594 }
 0x187   : > { %642 = vxpose.xlu1.b32.cont [4/16] (narrow) %v581_v15, 8  ;;  %609 = vxpose.xlu0.b32.cont [4/16] (narrow) %v526_v13, 8 }
 0x18a   : > { %v546_v22 = vpop.xlane.xlu0 %545  ;;  %v530_v23 = vpop.xlane.xlu1 %529 }
 0x18e   : > { %v585_v24 = vpop.xlane.xlu1 %584  ;;  %v528_v25 = vpop.xlane.xlu0 %527 }
 0x18f   : > { %993 = shalt.err (!%p990_p3)
}
 0x190   : > { %s994_s12 = scalar_lea.hbm %s1320_s19, 2048  ;;  %s998_s15 = scalar_lea.hbm %s1434_s4, 4096 }
 0x191   : > { %p995_p4 = scmp.ne.s32.totalorder %s1320_s19, %s994_s12  ;;  %p999_p9 = scmp.lt.s32.totalorder %s1320_s19, %s1434_s4 }
 0x192   : > { %p1000_p10 = scmp.lt.s32.totalorder %s998_s15, %s994_s12 }
 0x193   : > { %p996_p7 = pnand %p995_p4, %p1178_p5 }
 0x194   : > { %p1001_p11 = por %p1000_p10, %p999_p9 }
 0x195   : > { %p997_p8 = pneg %p996_p7 }
 0x197   : > { %p1002_p12 = pnand %p1001_p11, %p997_p8 }
 0x199   : > { %1005 = shalt.err (!%p1002_p12)
}
 0x19a   : > { %s1099_s28 = smov 128   ;;  %s1100_s9 = smov 8   ;;  %610 = vxpose.xlu0.b32.cont [5/16] (narrow) %v528_v25, 8  ;;  %v583_v26 = vpop.xlane.xlu0 %582  ;;  %v601_v27 = vpop.xlane.xlu1 %600 }
 0x19b   : > { %929 = dma.vmem_to_hbm [thread:$0]  (%p1178_p5), %s1322_s16, 2048, %s1320_s19, %s673_s20, %s1099_s28, %s1099_s28, %s1100_s9   ;;  %643 = vxpose.xlu1.b32.cont [5/16] (narrow) %v583_v26, 8 }
 0x19c   : > { %s254_s16 = scalar_lea.vmem [#allocation4], %s1240_s29  ;;  %s677_s20 = sand.u32 1, %s1159_s25  }
 0x19d   : > { %s710_s19 = sshll.u32 %s254_s16, 4  ;;  %s863_s10 = sshll.u32 %s1159_s25, 4  ;;  %s1356_s19 = int_to_ptr.vmem [resolvable:$true] %s710_s19 }
 0x19e   : > { %611 = vxpose.xlu0.b32.cont [6/16] (narrow) %v530_v23, 8  ;;  %v544_v28 = vpop.xlane.xlu0 %543  ;;  %v599_v29 = vpop.xlane.xlu1 %598  ;;  %s1363_s13 = scalar_lea.hbm %s1435_s5, %s863_s10  ;;  %s1438_s14 = scalar_lea.vmem [#allocation6], %s1240_s29 }
 0x19f   : > { %644 = vxpose.xlu1.b32.cont [6/16] (narrow) %v585_v24, 8  ;;  %s723_s15 = sshll.u32 %s1438_s14, 4  ;;  %s1368_s17 = scalar_lea.sflag [#allocation5], %s677_s20  ;;  %s724_s15 = int_to_ptr.vmem [resolvable:$true] %s723_s15 }
 0x1a0   : > { %s1006_s18 = scalar_lea.vmem %s1356_s19, 16  ;;  %s1101_s28 = smov [#allocation4]  }
 0x1a1   : > { %p1007_p13 = scmp.ne.s32.totalorder %s1356_s19, %s1006_s18  ;;  %s1010_s9 = sshll.u32 %s1101_s28, 4  ;;  %s1011_s9 = int_to_ptr.vmem [resolvable:$false] %s1010_s9 }
 0x1a2   : > { %v550_v30 = vpop.xlane.xlu0 %549  ;;  %v534_v32 = vpop.xlane.xlu1 %533  ;;  %s1012_s11 = scalar_lea.vmem %s1011_s9, 32  ;;  %p1013_p2 = scmp.lt.s32.totalorder %s1356_s19, %s1011_s9 }
 0x1a3   : > { %p1008_p0 = pnand %p1007_p13, %p1178_p5  ;;  %p1014_p3 = scmp.lt.s32.totalorder %s1012_s11, %s1006_s18 }
 0x1a5   : > { %p1009_p1 = pneg %p1008_p0  ;;  %p1015_p4 = por %p1014_p3, %p1013_p2 }
 0x1a6   : > { %v532_v31 = vpop.xlane.xlu0 %531  ;;  %v589_v34 = vpop.xlane.xlu1 %588 }
 0x1a7   : > { %612 = vxpose.xlu0.b32.cont [7/16] (narrow) %v532_v31, 8  ;;  %p1016_p7 = pnand %p1015_p4, %p1009_p1 }
 0x1aa   : > { %v587_v33 = vpop.xlane.xlu0 %586  ;;  %v605_v35 = vpop.xlane.xlu1 %604 }
 0x1ab   : > { %613 = vxpose.xlu0.b32.cont [8/16] (narrow) %v534_v32, 8  ;;  %645 = vxpose.xlu1.b32.cont [7/16] (narrow) %v587_v33, 8 }
 0x1ae   : > { %v548_v36 = vpop.xlane.xlu0 %547  ;;  %v603_v37 = vpop.xlane.xlu1 %602 }
 0x1af   : > { %614 = vxpose.xlu0.b32.cont [9/16] (narrow) %v1309_v14, 8  ;;  %646 = vxpose.xlu1.b32.cont [8/16] (narrow) %v589_v34, 8 }
 0x1b3   : > { %615 = vxpose.xlu0.b32.cont [10/16] (narrow) %v1305_v9, 8  ;;  %647 = vxpose.xlu1.b32.cont [9/16] (narrow) %v1307_v10, 8 }
 0x1b7   : > { %616 = vxpose.xlu0.b32.cont [11/16] (narrow) %v540_v20, 8  ;;  %648 = vxpose.xlu1.b32.cont [10/16] (narrow) %v1303_v8, 8 }
 0x1bb   : > { %617 = vxpose.xlu0.b32.cont [12/16] (narrow) %v1311_v16, 8  ;;  %649 = vxpose.xlu1.b32.cont [11/16] (narrow) %v595_v21, 8 }
 0x1bf   : > { %618 = vxpose.xlu0.b32.cont [13/16] (narrow) %v544_v28, 8  ;;  %650 = vxpose.xlu1.b32.cont [12/16] (narrow) %v1313_v17, 8 }
 0x1c3   : > { %619 = vxpose.xlu0.b32.cont [14/16] (narrow) %v546_v22, 8  ;;  %651 = vxpose.xlu1.b32.cont [13/16] (narrow) %v599_v29, 8 }
 0x1c7   : > { %652 = vxpose.xlu1.b32.cont [14/16] (narrow) %v601_v27, 8  ;;  %620 = vxpose.xlu0.b32.cont [15/16] (narrow) %v548_v36, 8 }
 0x1cb   : > { %653 = vxpose.xlu1.b32.cont [15/16] (narrow) %v603_v37, 8  ;;  %621 = vxpose.xlu0.b32.end [16/16] (narrow) %v550_v30, 8 }
 0x1cf   : > { %654 = vxpose.xlu1.b32.end [16/16] (narrow) %v605_v35, 8 }
 0x20b   : > { %v622_v38 = vpop.trf.xlu0 }
 0x20c   : > { %638 = vst [vmem:[%s254_s16] sm:$0x1] %v622_v38 }
 0x20d   : > { %1019 = shalt.err (!%p1016_p7)
}
 0x20e   : > { %s1020_s16 = scalar_lea.hbm %s1363_s13, 16  ;;  %s1024_s28 = scalar_lea.hbm %s1435_s5, 32 }
 0x20f   : > { %p1021_p8 = scmp.ne.s32.totalorder %s1363_s13, %s1020_s16  ;;  %p1025_p11 = scmp.lt.s32.totalorder %s1363_s13, %s1435_s5 }
 0x210   : > { %p1026_p12 = scmp.lt.s32.totalorder %s1024_s28, %s1020_s16 }
 0x211   : > { %p1022_p9 = pnand %p1021_p8, %p1178_p5 }
 0x212   : > { %p1027_p13 = por %p1026_p12, %p1025_p11 }
 0x213   : > { %p1023_p10 = pneg %p1022_p9 }
 0x215   : > { %p1028_p0 = pnand %p1027_p13, %p1023_p10 }
 0x217   : > { %1031 = shalt.err (!%p1028_p0)
}
 0x218   : > { %930 = dma.vmem_to_hbm [thread:$0]  (%p1178_p5), %s1356_s19, 16, %s1363_s13, %s1368_s17   ;;  %v655_v39 = vpop.trf.xlu1 }
 0x219   : > { %s721_s26 = scalar_lea.hbm %s1436_s6, %s863_s10  ;;  %s1441_s14 = scalar_lea.vmem [#allocation6], %s1240_s29 }
 0x21a   : > { %671 = vst [vmem:[%s1441_s14] sm:$0x1] %v655_v39  ;;  %s1032_s11 = scalar_lea.vmem %s724_s15, 16  ;;  %s1102_s16 = smov [#allocation6]  }
 0x21b   : > { %p1033_p1 = scmp.ne.s32.totalorder %s724_s15, %s1032_s11  ;;  %s1036_s20 = sshll.u32 %s1102_s16, 4  ;;  %s1037_s20 = int_to_ptr.vmem [resolvable:$false] %s1036_s20 }
 0x21c   : > { %s1038_s12 = scalar_lea.vmem %s1037_s20, 32  ;;  %p1039_p4 = scmp.lt.s32.totalorder %s724_s15, %s1037_s20 }
 0x21d   : > { %p1034_p2 = pnand %p1033_p1, %p1178_p5  ;;  %p1040_p7 = scmp.lt.s32.totalorder %s1038_s12, %s1032_s11 }
 0x21f   : > { %p1035_p3 = pneg %p1034_p2  ;;  %p1041_p8 = por %p1040_p7, %p1039_p4 }
 0x221   : > { %p1042_p9 = pnand %p1041_p8, %p1035_p3 }
 0x223   : > { %1045 = shalt.err (!%p1042_p9)
}
 0x224   : > { %s1046_s25 = scalar_lea.hbm %s721_s26, 16  ;;  %s1050_s10 = scalar_lea.hbm %s1436_s6, 32 }
 0x225   : > { %p1047_p10 = scmp.ne.s32.totalorder %s721_s26, %s1046_s25  ;;  %p1051_p13 = scmp.lt.s32.totalorder %s721_s26, %s1436_s6 }
 0x226   : > { %p1052_p0 = scmp.lt.s32.totalorder %s1050_s10, %s1046_s25 }
 0x227   : > { %p1048_p11 = pnand %p1047_p10, %p1178_p5 }
 0x228   : > { %p1053_p1 = por %p1052_p0, %p1051_p13 }
 0x229   : > { %p1049_p12 = pneg %p1048_p11 }
 0x22b   : > { %p1054_p2 = pnand %p1053_p1, %p1049_p12 }
 0x22d   : > { %1057 = shalt.err (!%p1054_p2)
}
 0x22e   : > { %931 = dma.vmem_to_hbm [thread:$0]  (%p1178_p5), %s724_s15, 16, %s721_s26, %s1368_s17  }
 0x22f PF: > { %p945_p3 = scmp.ge.s32.totalorder %s1096_s24, 2  ;;  %s735_s18 = sand.u32 1, %s1084_s21  }
 0x230   : > { %s736_s9 = scalar_lea.sflag [#allocation3], %s735_s18 }
 0x231   : > { %p936_p4 = pnand %p945_p3, %p1182_p6 }
 0x233   : > { %p937_p7 = pneg %p936_p4 }
 0x235   : > { %1075 = dma.done.wait (%p937_p7), %s736_s9, 2048  }
 0x236   : > { %1077 = vsyncadd (%p937_p7), %s736_s9, 4294965248  ;;  %s1442_s14 = sadd.s32 4294967294, %s1096_s24  }
 0x237   : > { %s744_s11 = sand.u32 1, %s1442_s14  }
 0x238   : > { %s745_s16 = scalar_lea.sflag [#allocation5], %s744_s11 }
 0x239   : > { %1079 = dma.done.wait (%p937_p7), %s745_s16, 32  }
 0x23a   : > { %1081 = vsyncadd (%p937_p7), %s745_s16, 4294967264  ;;  %p20_p5 = scmp.ge.s32.totalorder %s1163_s27, 4   ;;  %s1443_s21 = smov %s1088_s22 }
 0x23b   : > { %s1444_s22 = smov %s1092_s23  ;;  %s1445_s23 = smov %s1176_s30 }
 0x23c   : > { %s1446_s24 = smov %s1163_s27  ;;  %22 = sbr.rel (!%p20_p5) target bundleno = 5 (0x5), region = 103 }
 0x241   :  { %757 = vsyncpa [#allocation3], 1 }
 0x242   :  { %759 = vsyncpa [#allocation3 + $0x1], 1 }
 0x243   :  { %760 = vsyncpa [#allocation5], 1 }
 0x244   :  { %762 = vsyncpa [#allocation5 + $0x1], 1 }

</bundles_post_ra>
